<compile_context>
chip_gen: v6e
topology: v6e:2x2x1
jax: 0.10.0
libtpu: 0.0.40
codegen_flags: <defaults>
</compile_context>

<pallas_src>
import jax
import jax.numpy as jnp
from jax import lax
from jax.experimental import pallas as pl
from jax.experimental.pallas import tpu as pltpu


def _round_up(x, m):
    return (x + m - 1) // m * m


def _cdiv(a, b):
    return (a + b - 1) // b


def nsm_kernel(x_ref, w_ref, b_ref, out_ref):
    """One row-tile of the fused NSM forward.

    x_ref:   (tile, K) packed input rows (original dtype)          [VMEM]
    w_ref:   (pack, K) block-diagonal fused weight, float32        [VMEM, resident]
    b_ref:   (1,)      fused bias W2 @ b1 + b2, float32            [SMEM scalar]
    out_ref: (pack, tile) float32, lane-dense output block
             out[j, i] = z[pack * (block_start + i) + j]
    """
    xv = x_ref[...].astype(jnp.float32)        # no-op for f32 inputs
    z = lax.dot_general(
        w_ref[...], xv,
        dimension_numbers=(((1,), (1,)), ((), ())),
        preferred_element_type=jnp.float32,
    )                                          # (pack, tile), lane-dense
    out_ref[...] = (z + b_ref[0]).astype(out_ref.dtype)


def nsm_forward(f_g_hist, w1, b1, w2, b2, *, block_rows=32768):
    """NSM forward (linear1 -> linear2 -> squeeze(-1)) as a Pallas TPU kernel.

    f_g_hist: (B, G, N) float32
    w1: (2N, N), b1: (2N,), w2: (1, 2N), b2: (1,)   (PyTorch nn.Linear layout)
    returns:  (B, G) float32
    """
    B, G, N = f_g_hist.shape
    M = B * G

    # Exact composition of the two affine layers (no activation in between).
    w_eff = (w2 @ w1).astype(jnp.float32)            # (1, N), kept in f32
    b_eff = (w2 @ b1 + b2).astype(jnp.float32)       # (1,) scalar -> SMEM

    # Lane packing: fold `pack` consecutive logical rows into one 128-lane row.
    if N <= 128 and 128 % N == 0 and M % (128 // N) == 0:
        pack = 128 // N
    else:
        # TODO(synk): generic N / non-divisible M fall back to lane-padded tiles.
        pack = 1
    Mp, K = M // pack, N * pack

    x2d = f_g_hist.reshape(Mp, K)                    # contiguous reshape: no copy
    # Block-diagonal fused weight: row j holds w_eff in columns [j*N, (j+1)*N).
    w_bd = jnp.kron(jnp.eye(pack, dtype=jnp.float32), w_eff)   # (pack, K)

    # ---- tile sizing --------------------------------------------------------
    # Target >= ~2-4 MiB of x per grid step so the ~0.35us/step overhead is
    # amortized; cap the (lane-padded) double-buffered x tile at ~16 MiB.
    itemsize = jnp.dtype(x2d.dtype).itemsize
    row_vmem = max(_round_up(K, 128), 128) * itemsize          # VMEM bytes / packed row
    cap_rows = max(128, ((16 * 1024 * 1024) // (2 * row_vmem)) // 128 * 128)
    tile = max(128, _round_up(block_rows // pack, 128))
    tile = min(tile, cap_rows)

    if Mp <= tile:
        tile = Mp                                   # single block, no overhang
        grid = 1
    else:
        if Mp >= 4096:
            # Keep grid >= 2 so the "parallel" axis can shard across both
            # v7x TensorCores for large inputs.
            tile = min(tile, _round_up(_cdiv(Mp, 2), 128))
        grid = _cdiv(Mp, tile)                      # last block may overhang;
                                                    # OOB rows are never consumed

    out = pl.pallas_call(
        nsm_kernel,
        out_shape=jax.ShapeDtypeStruct((pack, Mp), jnp.float32),
        grid=(grid,),
        in_specs=[
            pl.BlockSpec((tile, K), lambda i: (i, 0)),            # x rows (tiled)
            pl.BlockSpec((pack, K), lambda i: (0, 0)),            # fused weight (resident)
            pl.BlockSpec(memory_space=pltpu.MemorySpace.SMEM),    # fused bias scalar
        ],
        out_specs=pl.BlockSpec((pack, tile), lambda i: (0, i)),   # lane-dense output
        compiler_params=pltpu.CompilerParams(
            dimension_semantics=("parallel",),
            vmem_limit_bytes=32 * 1024 * 1024),
    )(x2d, w_bd, b_eff)

    # out[j, i] = z[pack*i + j]; this transpose+reshape touches only M*8 bytes
    # (~3% of the f32 input traffic).
    return out.T.reshape(B, G)


def init_params(key, n_feature):
    """Deterministic init mimicking nn.Linear defaults: U(-1/sqrt(fan_in), +)."""
    k1, k2, k3, k4 = jax.random.split(key, 4)
    h = 2 * n_feature
    bound1 = 1.0 / jnp.sqrt(n_feature)
    bound2 = 1.0 / jnp.sqrt(h)
    w1 = jax.random.uniform(k1, (h, n_feature), jnp.float32, -bound1, bound1)
    b1 = jax.random.uniform(k2, (h,), jnp.float32, -bound1, bound1)
    w2 = jax.random.uniform(k3, (1, h), jnp.float32, -bound2, bound2)
    b2 = jax.random.uniform(k4, (1,), jnp.float32, -bound2, bound2)
    return w1, b1, w2, b2


def _ref_two_layer(x, w1, b1, w2, b2):
    """Pure-JAX f32 reference: linear1 -> linear2 -> squeeze(-1)."""
    return ((x @ w1.T + b1) @ w2.T + b2)[..., 0]


def _ref_fused(x, w1, b1, w2, b2):
    """Pure-JAX reference of the fused affine map used by the kernel."""
    w_eff = (w2 @ w1)[0]                 # (N,)
    b_eff = (w2 @ b1 + b2)[0]
    return jnp.einsum("bgn,n->bg", x, w_eff) + b_eff


def _check(out, x, w1, b1, w2, b2):
    # Loose tolerance covers possible reduced-precision MXU accumulation paths.
    assert jnp.allclose(out, _ref_fused(x, w1, b1, w2, b2), atol=3e-2, rtol=3e-2)
    assert jnp.allclose(out, _ref_two_layer(x, w1, b1, w2, b2), atol=3e-2, rtol=3e-2)


if __name__ == "__main__":
    key = jax.random.PRNGKey(0)
    kx0, kx1, kx2, kx3, kp = jax.random.split(key, 5)

    n_feature = 32
    w1, b1, w2, b2 = init_params(kp, n_feature)

    # Small demo shape consistent with the module: (batch, group, n_feature).
    batch_size, group_size = 2, 8
    f_g_hist = jax.random.normal(
        kx0, (batch_size, group_size, n_feature), dtype=jnp.float32)
    out = jax.block_until_ready(nsm_forward(f_g_hist, w1, b1, w2, b2))
    assert out.shape == (batch_size, group_size)
    _check(out, f_g_hist, w1, b1, w2, b2)

    # Single big block (M=4000 packed to 1000 lane-dense rows).
    x_a = jax.random.normal(kx1, (8, 500, n_feature), dtype=jnp.float32)
    out_a = jax.block_until_ready(nsm_forward(x_a, w1, b1, w2, b2))
    assert out_a.shape == (8, 500)
    _check(out_a, x_a, w1, b1, w2, b2)

    # Multi-block path with an overhanging (ragged) last block.
    out_b = jax.block_until_ready(nsm_forward(x_a, w1, b1, w2, b2, block_rows=2048))
    assert out_b.shape == (8, 500)
    _check(out_b, x_a, w1, b1, w2, b2)

    # Large input: forced grid>=2 split (megacore) with ragged last block.
    x_c = jax.random.normal(kx2, (16, 2100, n_feature), dtype=jnp.float32)
    out_c = jax.block_until_ready(nsm_forward(x_c, w1, b1, w2, b2))
    assert out_c.shape == (16, 2100)
    _check(out_c, x_c, w1, b1, w2, b2)

    # M not divisible by the pack factor -> pack=1 fallback path.
    x_d = jax.random.normal(kx3, (3, 7, n_feature), dtype=jnp.float32)
    out_d = jax.block_until_ready(nsm_forward(x_d, w1, b1, w2, b2))
    assert out_d.shape == (3, 7)
    _check(out_d, x_d, w1, b1, w2, b2)

    print("KERNEL_OK")
</pallas_src>

<mosaic_0001>
module attributes {stable_mosaic.version = 11 : i64} {
  func.func @nsm_kernel(%arg0: i32, %arg1: memref<4x128xf32, #tpu.memory_space<vmem>>, %arg2: memref<4x128xf32, #tpu.memory_space<vmem>>, %arg3: memref<1xf32, #tpu.memory_space<smem>>, %arg4: memref<4x4xf32, #tpu.memory_space<vmem>>) attributes {dimension_semantics = [#tpu.dimension_semantics<parallel>], iteration_bounds = array<i64: 1>, scalar_prefetch = 0 : i64, scratch_operands = 0 : i64, tpu.core_type = #tpu.core_type<tc>, window_params = [{transform_indices = @transform_0, window_bounds = array<i64: 4, 128>}, {pipeline_mode = #tpu.pipeline_mode<synchronous>, transform_indices = @transform_1, window_bounds = array<i64: 4, 128>}, {transform_indices = @transform_2, window_bounds = array<i64: 1>}, {transform_indices = @transform_3, window_bounds = array<i64: 4, 4>}]} {
    %c0 = arith.constant 0 : index
    %c0_0 = arith.constant 0 : index
    %0 = vector.load %arg1[%c0, %c0_0] : memref<4x128xf32, #tpu.memory_space<vmem>>, vector<4x128xf32>
    %c0_1 = arith.constant 0 : index
    %c0_2 = arith.constant 0 : index
    %1 = vector.load %arg2[%c0_1, %c0_2] : memref<4x128xf32, #tpu.memory_space<vmem>>, vector<4x128xf32>
    %cst = arith.constant dense<0.000000e+00> : vector<4x4xf32>
    %2 = tpu.matmul %1, %0, %cst {dimension_numbers = #tpu.dot_dimension_numbers<[1], [1], [0], [0], [0, 0, 1, 0], [], []>} : vector<4x128xf32>, vector<4x128xf32>, vector<4x4xf32> -> vector<4x4xf32>
    %c0_3 = arith.constant 0 : index
    %3 = memref.load %arg3[%c0_3] : memref<1xf32, #tpu.memory_space<smem>>
    %4 = vector.broadcast %3 : f32 to vector<4x4xf32>
    %5 = arith.addf %2, %4 : vector<4x4xf32>
    %c0_4 = arith.constant 0 : index
    %c0_5 = arith.constant 0 : index
    %6 = vector.load %arg4[%c0_4, %c0_5] : memref<4x4xf32, #tpu.memory_space<vmem>>, vector<4x4xf32>
    tpu.vector_store %arg4[%c0_4, %c0_5], %5 {strides = array<i32>} : memref<4x4xf32, #tpu.memory_space<vmem>>, vector<4x4xf32>,
    return
  }
  func.func @transform_0(%arg0: i32) -> (i32, i32) {
    %c0_i32 = arith.constant 0 : i32
    %c0_i32_0 = arith.constant 0 : i32
    return %arg0, %c0_i32 : i32, i32
  }
  func.func @transform_1(%arg0: i32) -> (i32, i32) {
    %c0_i32 = arith.constant 0 : i32
    %c0_i32_0 = arith.constant 0 : i32
    %c0_i32_1 = arith.constant 0 : i32
    return %c0_i32, %c0_i32_0 : i32, i32
  }
  func.func @transform_2(%arg0: i32) -> i32 {
    %c0_i32 = arith.constant 0 : i32
    %c0_i32_0 = arith.constant 0 : i32
    return %c0_i32 : i32
  }
  func.func @transform_3(%arg0: i32) -> (i32, i32) {
    %c0_i32 = arith.constant 0 : i32
    %c0_i32_0 = arith.constant 0 : i32
    return %c0_i32, %arg0 : i32, i32
  }
}

</mosaic_0001>

<bundles_post_ra>
// kernel: tpu_custom_call.1
= control target key start
LH: loop header
LB: loop body
LE: loop exit
PB: predicated region body
PF: predicated region fallthrough
CT: control target
= control target key end

     0   :  { %9 = vsyncpa [#allocation4], 0  ;;  %s247_s0 = inlined_call_operand.hbm [shape: f32[4,128], index: 0, kind: input, shape index: {}]   ;;  %s248_s1 = inlined_call_operand.hbm [shape: f32[4,128], index: 1, kind: input, shape index: {}]   ;;  %s249_s2 = inlined_call_operand.<no memory space> [shape: f32[1], index: 2, kind: input, shape index: {}]   ;;  %s250_s3 = inlined_call_operand.hbm [shape: f32[4,4], index: 3, kind: output, shape index: {}]  }
   0x1   :  { %10 = vsyncpa [#allocation7], 0 }
   0x2   :  { %11 = vsyncpa [#allocation5], 0  ;;  %s210_s12 = smov [#allocation3]   ;;  %s211_s14 = smov [#allocation6]  }
   0x3   :  { %s18_s13 = sshll.u32 %s210_s12, 4  ;;  %s28_s15 = sshll.u32 %s211_s14, 4  ;;  %s19_s13 = int_to_ptr.vmem [resolvable:$true] %s18_s13  ;;  %s29_s15 = int_to_ptr.vmem [resolvable:$true] %s28_s15 }
   0x4   :  { %s152_s16 = scalar_lea.vmem %s19_s13, 64  ;;  %p157_p1 = scmp.lt.s32.totalorder %s19_s13, %s19_s13 }
   0x5   :  { %p153_p0 = scmp.ne.s32.totalorder %s19_s13, %s152_s16  ;;  %p158_p2 = scmp.lt.s32.totalorder %s152_s16, %s152_s16 }
   0x7   :  { %p159_p3 = por %p158_p2, %p157_p1 }
   0x9   :  { %p160_p4 = pnand %p159_p3, %p153_p0 }
   0xb   :  { %163 = shalt.err (!%p160_p4)
}
   0xc   :  { %21 = dma.hbm_to_vmem [thread:$0]  %s247_s0, 64, %s19_s13, [#allocation4]  }
   0xd   :  { %s172_s19 = scalar_lea.vmem %s29_s15, 64  ;;  %p177_p6 = scmp.lt.s32.totalorder %s29_s15, %s29_s15 }
   0xe   :  { %p173_p5 = scmp.ne.s32.totalorder %s29_s15, %s172_s19  ;;  %p178_p7 = scmp.lt.s32.totalorder %s172_s19, %s172_s19 }
  0x10   :  { %p179_p8 = por %p178_p7, %p177_p6 }
  0x12   :  { %p180_p9 = pnand %p179_p8, %p173_p5 }
  0x14   :  { %183 = shalt.err (!%p180_p9)
}
  0x15   :  { %31 = dma.hbm_to_vmem [thread:$0]  %s248_s1, 64, %s29_s15, [#allocation7]  }
  0x16   :  { %204 = dma.done.wait [#allocation4], 64  }
  0x17   :  { %205 = vsyncadd [#allocation4], 4294967232 }
  0x18   :  { %206 = dma.done.wait [#allocation7], 64  }
  0x19   :  { %207 = vsyncadd [#allocation7], 4294967232  ;;  %v212_v0 = vmov 0.0   ;;  %vm213_vm0 = vmmov 0   ;;  %v40_v1 = vld [vmem:[#allocation3] sm:$0xf]  ;;  %v43_v3 = vstv %s249_s2 }
  0x1a   :  { %134 = vmatprep.subr.mxu0 %v212_v0  ;;  %136 = vmatprep.mubr.msk.f32.mxu0 %vm213_vm0, %v212_v0  ;;  %v41_v2 = vld [vmem:[#allocation6] sm:$0xf]  ;;  %s214_s23 = smov [#allocation8]   ;;  %vm114_vm1 = vcmask 27648  }
  0x1b   :  { %135 = vmatpush3.xpose.msra.mxu0 %v40_v1  ;;  %s122_s24 = sshll.u32 %s214_s23, 4  ;;  %s123_s24 = int_to_ptr.vmem [resolvable:$true] %s122_s24 }
  0x1c   :  { %s184_s1 = scalar_lea.vmem %s123_s24, 64  ;;  %p189_p11 = scmp.lt.s32.totalorder %s123_s24, %s123_s24 }
  0x1d   :  { %p185_p10 = scmp.ne.s32.totalorder %s123_s24, %s184_s1  ;;  %p190_p12 = scmp.lt.s32.totalorder %s184_s1, %s184_s1 }
  0x1e   :  { %137 = vmatmul.mubr.f32.vlgmr.msra.gmra.mxu0 %v41_v2 }
  0x1f   :  { %p191_p13 = por %p190_p12, %p189_p11 }
  0x21   :  { %p192_p0 = pnand %p191_p13, %p185_p10 }
  0xde   :  { %v110_v4 = vpop.f32.mrf.mxu0 }
  0xdf   :  { %v111_v5 = vadd.f32 %v110_v4, %v43_v3 }
  0xe0   :  { %v138_v6 = vpop.f32.mrf.mxu0 }
  0xe1   :  { %115 = vst.msk [vmem:[#allocation8] sm:$0xf] %vm114_vm1, %v111_v5 }
  0xe2   :  { %195 = shalt.err (!%p192_p0)
}
  0xe3   :  { %125 = dma.vmem_to_hbm [thread:$0]  %s123_s24, 64, %s250_s3, [#allocation5]  }
  0xe4   :  { %208 = dma.done.wait [#allocation5], 64  }
  0xe5   :  { %209 = vsyncadd [#allocation5], 4294967232 }
  0xe6   :  { %129 = vsyncpa [#allocation4], 1 }
  0xe7   :  { %130 = vsyncpa [#allocation7], 1 }
  0xe8   :  { %131 = vsyncpa [#allocation5], 1 }

</bundles_post_ra>
